<compile_context>
chip_gen: v6e
topology: v6e:2x2x1
jax: 0.10.0
libtpu: 0.0.40
codegen_flags: <defaults>
</compile_context>

<pallas_src>
import jax
import jax.numpy as jnp
from jax.experimental import pallas as pl
from jax.experimental.pallas import tpu as pltpu

_LANE = 128
_MiB = 1024 * 1024

# K handling: up to this size the whole reduction dim is a single block
# (no K tiling, no padding of x or weight along K).  Above it, tile K.
_TK_FULL_MAX = 2048
_TK_TILE = 1024

# (tm_cap, tn_cap) candidates, largest first; the first whose double-buffered
# working set fits the per-generation VMEM budget wins.
_TILE_CANDIDATES = (
    (512, 1024),
    (512, 512),
    (256, 512),
    (256, 256),
    (128, 256),
    (128, 128),
)


def _round_up(x: int, m: int) -> int:
    return (x + m - 1) // m * m


def _plan_k(d_in: int):
    """(tk, padded K).  Depends only on d_in so the weight can be padded at init."""
    if d_in <= _TK_FULL_MAX:
        return d_in, d_in
    return _TK_TILE, _round_up(d_in, _TK_TILE)


def _vmem_budget():
    """(double-buffered working-set budget, vmem_limit cap) in bytes."""
    try:
        cap = pltpu.get_tpu_info().vmem_capacity_bytes
        # v7x: 64 MiB -> ~21 MiB working set; v5e/v6e: 128 MiB -> 40 MiB.
        return min(cap // 3, 40 * _MiB), min(int(cap * 0.7), 96 * _MiB)
    except Exception:  # interpret mode / API unavailable: safe everywhere
        return 20 * _MiB, 40 * _MiB


def _largest_divisor_tile(total: int, cap: int) -> int:
    """Largest multiple of 128 that divides `total` (a multiple of 128), <= cap."""
    t = max(_LANE, (min(cap, total) // _LANE) * _LANE)
    while total % t:
        t -= _LANE
    return t


def _pick_tiles(B, Np, tk, x_item, w_item, out_item, use_scratch, ws_budget):
    choice = None
    for tm_cap, tn_cap in _TILE_CANDIDATES:
        tm = B if B <= tm_cap else tm_cap          # full-M block avoids padding
        tn = _largest_divisor_tile(Np, tn_cap)
        m_blocks = -(-B // tm)
        # Keep >= 2 blocks on a parallel axis so dual-TensorCore chips (v7x)
        # can split the grid even for small-batch linears.
        if m_blocks == 1 and Np // tn < 2 and Np >= 2 * _LANE:
            tn = _largest_divisor_tile(Np, Np // 2)
        ws = (2 * tm * tk * x_item            # x tile, double buffered
              + 2 * tk * tn * w_item          # w tile, double buffered
              + 2 * tn * w_item               # bias row
              + 2 * tm * tn * out_item        # output block
              + (tm * tn * 4 if use_scratch else 0))
        choice = (tm, tn, ws)
        if ws <= ws_budget:
            break
    return choice


def _linear_kernel_f32(x_ref, w_ref, b_ref, o_ref):
    """f32 output: accumulate directly into the resident output block."""
    k = pl.program_id(2)

    @pl.when(k == 0)
    def _init():
        # seed with the bias (broadcast 1 x tn -> tm x tn)
        o_ref[...] = b_ref[...] + jnp.zeros(o_ref.shape, o_ref.dtype)

    o_ref[...] += jnp.dot(x_ref[...], w_ref[...],
                          preferred_element_type=jnp.float32)


def _linear_kernel_acc(x_ref, w_ref, b_ref, o_ref, acc_ref):
    """Low-precision output: f32 VMEM accumulator, single downcast at the end."""
    k = pl.program_id(2)

    @pl.when(k == 0)
    def _init():
        acc_ref[...] = (b_ref[...].astype(jnp.float32)
                        + jnp.zeros(acc_ref.shape, jnp.float32))

    acc_ref[...] += jnp.dot(x_ref[...], w_ref[...],
                            preferred_element_type=jnp.float32)

    @pl.when(k == pl.num_programs(2) - 1)
    def _fin():
        o_ref[...] = acc_ref[...].astype(o_ref.dtype)


def init_linear_params(key, d_in: int, n_out: int, dtype=jnp.float32):
    """Mimics torch.nn.Linear init.  Weight is stored pre-transposed to
    [D_in(pad), n_out(pad)] and bias to [1, n_out(pad)] — all padding is a
    one-time cost here, never in the forward path."""
    bound = 1.0 / (d_in ** 0.5)
    kw, kb = jax.random.split(key)
    weight = jax.random.uniform(kw, (n_out, d_in), dtype=dtype,
                                minval=-bound, maxval=bound)   # PyTorch layout
    bias = jax.random.uniform(kb, (n_out,), dtype=dtype,
                              minval=-bound, maxval=bound)

    tk, Kp = _plan_k(d_in)
    Np = _round_up(n_out, _LANE)
    weight_t = jnp.pad(jnp.asarray(weight.T),
                       ((0, Kp - d_in), (0, Np - n_out)))       # [Kp, Np]
    bias_p = jnp.pad(bias.reshape(1, n_out), ((0, 0), (0, Np - n_out)))
    return {"weight": weight_t, "bias": bias_p,
            "d_in": d_in, "n_out": n_out, "tk": tk}


def linear_forward(x, params):
    """x: [..., D_in]  ->  [..., n_out]."""
    d_in, n_out, tk = params["d_in"], params["n_out"], params["tk"]
    w_p, b_p = params["weight"], params["bias"]
    Kp, Np = w_p.shape

    assert x.shape[-1] == d_in, "last dim of x must equal D_in"
    lead = x.shape[:-1]
    x2 = x.reshape(-1, d_in)
    B = x2.shape[0]

    x_item = jnp.dtype(x.dtype).itemsize
    w_item = jnp.dtype(w_p.dtype).itemsize
    out_dtype = x.dtype
    out_item = jnp.dtype(out_dtype).itemsize
    use_scratch = jnp.dtype(out_dtype) != jnp.dtype(jnp.float32)

    ws_budget, vmem_cap = _vmem_budget()
    tm, tn, ws = _pick_tiles(B, Np, tk, x_item, w_item, out_item,
                             use_scratch, ws_budget)

    Mp = _round_up(B, tm)
    x_p = x2
    if Mp != B or Kp != d_in:   # only for huge misaligned K or B > tile cap
        x_p = jnp.pad(x2, ((0, Mp - B), (0, Kp - d_in)))

    grid = (Mp // tm, Np // tn, Kp // tk)

    kernel = _linear_kernel_acc if use_scratch else _linear_kernel_f32
    scratch = [pltpu.VMEM((tm, tn), jnp.float32)] if use_scratch else []

    cost = pl.CostEstimate(
        flops=2 * Mp * Kp * Np,
        transcendentals=0,
        bytes_accessed=(Mp * Kp * x_item * (Np // tn)     # x re-read per N block
                        + Kp * Np * w_item * (Mp // tm)   # w re-read per M block
                        + Np * w_item
                        + Mp * Np * out_item),
    )

    vmem_limit = int(min(vmem_cap, max(32 * _MiB, int(ws * 1.7))))

    out_p = pl.pallas_call(
        kernel,
        out_shape=jax.ShapeDtypeStruct((Mp, Np), out_dtype),
        grid_spec=pltpu.PrefetchScalarGridSpec(
            num_scalar_prefetch=0,
            grid=grid,
            in_specs=[
                pl.BlockSpec((tm, tk), lambda i, j, k: (i, k)),   # x tile
                pl.BlockSpec((tk, tn), lambda i, j, k: (k, j)),   # w tile
                pl.BlockSpec((1, tn), lambda i, j, k: (0, j)),    # bias row
            ],
            out_specs=pl.BlockSpec((tm, tn), lambda i, j, k: (i, j)),
            scratch_shapes=scratch,
        ),
        compiler_params=pltpu.CompilerParams(
            dimension_semantics=("parallel", "parallel", "arbitrary"),
            vmem_limit_bytes=vmem_limit,
        ),
        cost_estimate=cost,
    )(x_p, w_p, b_p)

    out = out_p[:B, :n_out]
    return out.reshape(*lead, n_out)


if __name__ == "__main__":
    key = jax.random.PRNGKey(0)
    k_x, k_p = jax.random.split(key)

    batch = 8
    in_features = 32   # LazyLinear infers this from the first input
    n_out = 10

    x = jax.random.normal(k_x, (batch, in_features), dtype=jnp.float32)
    params = init_linear_params(k_p, in_features, n_out)

    out = linear_forward(x, params)
    jax.block_until_ready(out)

    # sanity check against plain JAX reference (use the unpadded weight/bias)
    w_ref = params["weight"][:in_features, :n_out]
    b_ref = params["bias"][0, :n_out]
    ref = x @ w_ref + b_ref
    assert out.shape == (batch, n_out)
    assert jnp.allclose(out, ref, atol=1e-5, rtol=1e-5)

    print("KERNEL_OK")
</pallas_src>

<mosaic_0001>
module attributes {stable_mosaic.version = 11 : i64} {
  func.func @_linear_kernel_f32(%arg0: i32, %arg1: i32, %arg2: i32, %arg3: memref<8x32xf32, #tpu.memory_space<vmem>>, %arg4: memref<32x128xf32, #tpu.memory_space<vmem>>, %arg5: memref<1x128xf32, #tpu.memory_space<vmem>>, %arg6: memref<8x128xf32, #tpu.memory_space<vmem>>) attributes {dimension_semantics = [#tpu.dimension_semantics<parallel>, #tpu.dimension_semantics<parallel>, #tpu.dimension_semantics<arbitrary>], iteration_bounds = array<i64: 1, 1, 1>, scalar_prefetch = 0 : i64, scratch_operands = 0 : i64, tpu.core_type = #tpu.core_type<tc>, window_params = [{transform_indices = @transform_0, window_bounds = array<i64: 8, 32>}, {transform_indices = @transform_1, window_bounds = array<i64: 32, 128>}, {transform_indices = @transform_2, window_bounds = array<i64: 1, 128>}, {transform_indices = @transform_3, window_bounds = array<i64: 8, 128>}]} {
    %c0_i32 = arith.constant 0 : i32
    %0 = arith.cmpi eq, %arg2, %c0_i32 : i32
    %1 = arith.extui %0 : i1 to i32
    %c0_i32_0 = arith.constant 0 : i32
    %2 = arith.cmpi ne, %1, %c0_i32_0 : i32
    scf.if %2 {
      %c0_8 = arith.constant 0 : index
      %c0_9 = arith.constant 0 : index
      %9 = vector.load %arg5[%c0_8, %c0_9] : memref<1x128xf32, #tpu.memory_space<vmem>>, vector<1x128xf32>
      %cst_10 = arith.constant 0.000000e+00 : f32
      %10 = vector.broadcast %cst_10 : f32 to vector<8x128xf32>
      %11 = vector.broadcast %9 : vector<1x128xf32> to vector<8x128xf32>
      %12 = arith.addf %11, %10 : vector<8x128xf32>
      %c0_11 = arith.constant 0 : index
      %c0_12 = arith.constant 0 : index
      %13 = vector.load %arg6[%c0_11, %c0_12] : memref<8x128xf32, #tpu.memory_space<vmem>>, vector<8x128xf32>
      tpu.vector_store %arg6[%c0_11, %c0_12], %12 {strides = array<i32>} : memref<8x128xf32, #tpu.memory_space<vmem>>, vector<8x128xf32>,
    } else {
    }
    %c0 = arith.constant 0 : index
    %c0_1 = arith.constant 0 : index
    %3 = vector.load %arg6[%c0, %c0_1] : memref<8x128xf32, #tpu.memory_space<vmem>>, vector<8x128xf32>
    %c0_2 = arith.constant 0 : index
    %c0_3 = arith.constant 0 : index
    %4 = vector.load %arg3[%c0_2, %c0_3] : memref<8x32xf32, #tpu.memory_space<vmem>>, vector<8x32xf32>
    %c0_4 = arith.constant 0 : index
    %c0_5 = arith.constant 0 : index
    %5 = vector.load %arg4[%c0_4, %c0_5] : memref<32x128xf32, #tpu.memory_space<vmem>>, vector<32x128xf32>
    %cst = arith.constant dense<0.000000e+00> : vector<8x128xf32>
    %6 = tpu.matmul %4, %5, %cst {dimension_numbers = #tpu.dot_dimension_numbers<[1], [0], [0], [1], [0, 0, 1, 1], [], []>} : vector<8x32xf32>, vector<32x128xf32>, vector<8x128xf32> -> vector<8x128xf32>
    %7 = arith.addf %3, %6 : vector<8x128xf32>
    %c0_6 = arith.constant 0 : index
    %c0_7 = arith.constant 0 : index
    %8 = vector.load %arg6[%c0_6, %c0_7] : memref<8x128xf32, #tpu.memory_space<vmem>>, vector<8x128xf32>
    tpu.vector_store %arg6[%c0_6, %c0_7], %7 {strides = array<i32>} : memref<8x128xf32, #tpu.memory_space<vmem>>, vector<8x128xf32>,
    return
  }
  func.func @transform_0(%arg0: i32, %arg1: i32, %arg2: i32) -> (i32, i32) {
    %c0_i32 = arith.constant 0 : i32
    return %arg0, %arg2 : i32, i32
  }
  func.func @transform_1(%arg0: i32, %arg1: i32, %arg2: i32) -> (i32, i32) {
    %c0_i32 = arith.constant 0 : i32
    return %arg2, %arg1 : i32, i32
  }
  func.func @transform_2(%arg0: i32, %arg1: i32, %arg2: i32) -> (i32, i32) {
    %c0_i32 = arith.constant 0 : i32
    %c0_i32_0 = arith.constant 0 : i32
    return %c0_i32, %arg1 : i32, i32
  }
  func.func @transform_3(%arg0: i32, %arg1: i32, %arg2: i32) -> (i32, i32) {
    %c0_i32 = arith.constant 0 : i32
    return %arg0, %arg1 : i32, i32
  }
}

</mosaic_0001>

<bundles_post_ra>
// kernel: tpu_custom_call.1
= control target key start
LH: loop header
LB: loop body
LE: loop exit
PB: predicated region body
PF: predicated region fallthrough
CT: control target
= control target key end

     0   :  { %8 = vsyncpa [#allocation3], 0  ;;  %s282_s0 = inlined_call_operand.hbm [shape: f32[8,32], index: 0, kind: input, shape index: {}]   ;;  %s283_s1 = inlined_call_operand.hbm [shape: f32[32,128], index: 1, kind: input, shape index: {}]   ;;  %s284_s2 = inlined_call_operand.vmem [shape: f32[1,128], index: 2, kind: input, shape index: {}]   ;;  %s285_s3 = inlined_call_operand.hbm [shape: f32[8,128], index: 3, kind: output, shape index: {}]  }
   0x1   :  { %9 = vsyncpa [#allocation6], 0 }
   0x2   :  { %10 = vsyncpa [#allocation4], 0  ;;  %s243_s12 = smov [#allocation2]   ;;  %s244_s14 = smov [#allocation5]  }
   0x3   :  { %s17_s13 = sshll.u32 %s243_s12, 4  ;;  %s26_s15 = sshll.u32 %s244_s14, 4  ;;  %s18_s13 = int_to_ptr.vmem [resolvable:$true] %s17_s13  ;;  %s27_s15 = int_to_ptr.vmem [resolvable:$true] %s26_s15 }
   0x4   :  { %s185_s16 = scalar_lea.vmem %s18_s13, 128  ;;  %p190_p1 = scmp.lt.s32.totalorder %s18_s13, %s18_s13 }
   0x5   :  { %p186_p0 = scmp.ne.s32.totalorder %s18_s13, %s185_s16  ;;  %p191_p2 = scmp.lt.s32.totalorder %s185_s16, %s185_s16 }
   0x7   :  { %p192_p3 = por %p191_p2, %p190_p1 }
   0x9   :  { %p193_p4 = pnand %p192_p3, %p186_p0 }
   0xb   :  { %196 = shalt.err (!%p193_p4)
}
   0xc   :  { %20 = dma.hbm_to_vmem [thread:$0]  %s282_s0, 128, %s18_s13, [#allocation3]  }
   0xd   :  { %s205_s19 = scalar_lea.vmem %s27_s15, 512  ;;  %p210_p6 = scmp.lt.s32.totalorder %s27_s15, %s27_s15 }
   0xe   :  { %p206_p5 = scmp.ne.s32.totalorder %s27_s15, %s205_s19  ;;  %p211_p7 = scmp.lt.s32.totalorder %s205_s19, %s205_s19 }
  0x10   :  { %p212_p8 = por %p211_p7, %p210_p6 }
  0x12   :  { %p213_p9 = pnand %p212_p8, %p206_p5 }
  0x14   :  { %216 = shalt.err (!%p213_p9)
}
  0x15   :  { %s245_s20 = smov 128   ;;  %s246_s21 = smov 8  }
  0x16   :  { %32 = dma.hbm_to_vmem [thread:$0]  %s283_s1, 512, %s27_s15, [#allocation6], %s245_s20, %s245_s20, %s246_s21  }
  0x17   :  { %237 = dma.done.wait [#allocation3], 128  }
  0x18   :  { %238 = vsyncadd [#allocation3], 4294967168 }
  0x19   :  { %239 = dma.done.wait [#allocation6], 512  }
  0x1a   :  { %240 = vsyncadd [#allocation6], 4294966784  ;;  %v247_v0 = vmov 0.0   ;;  %vm248_vm0 = vmmov 0   ;;  %v59_v1 = vld [vmem:[#allocation5 + $0x18] sm:$0xff]  ;;  %v58_v2 = vld [vmem:[#allocation5 + $0x10] sm:$0xff] }
  0x1b   :  { %159 = vmatprep.subr.mxu0 %v247_v0  ;;  %167 = vmatprep.mubr.msk.f32.mxu0 %vm248_vm0, %v247_v0  ;;  %v57_v3 = vld [vmem:[#allocation5 + $0x8] sm:$0xff]  ;;  %v56_v4 = vld [vmem:[#allocation5] sm:$0xff]  ;;  %v55_v5 = vld [vmem:[#allocation2] sm:$0xff]  ;;  %vm60_vm1 = vcmask 261120   ;;  %s249_s24 = smov [#allocation7]  }
  0x1c   :  { %160 = vmatpush3.msra.mxu0 %v59_v1  ;;  %v152_v6 = vld [vmem:[%s284_s2] ss:$0 sm:$0xff]  ;;  %s142_s25 = sshll.u32 %s249_s24, 4  ;;  %s143_s25 = int_to_ptr.vmem [resolvable:$true] %s142_s25 }
  0x1d   :  { %161 = vmatprep.subr.mxu0 %v247_v0  ;;  %s217_s26 = scalar_lea.vmem %s143_s25, 128  ;;  %p222_p11 = scmp.lt.s32.totalorder %s143_s25, %s143_s25 }
  0x1e   :  { %162 = vmatpush3.msra.mxu0 %v58_v2  ;;  %p218_p10 = scmp.ne.s32.totalorder %s143_s25, %s217_s26  ;;  %p223_p12 = scmp.lt.s32.totalorder %s217_s26, %s217_s26 }
  0x1f   :  { %163 = vmatprep.subr.mxu0 %v247_v0 }
  0x20   :  { %164 = vmatpush3.msra.mxu0 %v57_v3  ;;  %p224_p13 = por %p223_p12, %p222_p11 }
  0x21   :  { %165 = vmatprep.subr.mxu0 %v247_v0 }
  0x22   :  { %166 = vmatpush3.msra.mxu0 %v56_v4  ;;  %p225_p0 = pnand %p224_p13, %p218_p10 }
  0x23   :  { %168 = vmatmul.mubr.msk.f32.vlgmr.msra.gmra.mxu0 %vm60_vm1, %v55_v5 }
  0xe3   :  { %v130_v7 = vpop.f32.mrf.mxu0 }
  0xe4   :  { %v134_v8 = vadd.f32 %v152_v6, %v130_v7 }
  0xe5   :  { %v169_v9 = vpop.f32.mrf.mxu0 }
  0xe6   :  { %135 = vst [vmem:[#allocation7] sm:$0xff] %v134_v8 }
  0xe7   :  { %228 = shalt.err (!%p225_p0)
}
  0xe8   :  { %145 = dma.vmem_to_hbm [thread:$0]  %s143_s25, 128, %s285_s3, [#allocation4]  }
  0xe9   :  { %241 = dma.done.wait [#allocation4], 128  }
  0xea   :  { %242 = vsyncadd [#allocation4], 4294967168 }
  0xeb   :  { %149 = vsyncpa [#allocation3], 1 }
  0xec   :  { %150 = vsyncpa [#allocation6], 1 }
  0xed   :  { %151 = vsyncpa [#allocation4], 1 }

</bundles_post_ra>
